<compile_context>
chip_gen: v6e
topology: v6e:2x2x1
jax: 0.10.0
libtpu: 0.0.40
codegen_flags: <defaults>
</compile_context>

<pallas_src>
from functools import partial

import numpy as np
import jax
import jax.numpy as jnp
from jax.experimental import pallas as pl
from jax.experimental.pallas import tpu as pltpu

# ----------------------------- config ------------------------------------
B, C, H, W = 2, 4, 16, 16           # small shapes consistent with the module
T = 1000
BETA_1, BETA_T = 1e-4, 0.02
HIDDEN = 32
HW = H * W                           # 256
N = B * HW                           # 512 -> lane axis (128-aligned), batch on lanes


# ------------------------------ kernel ------------------------------------
def _fused_trainer_kernel(inp_ref, gt_ref, noise_ref,
                          csab_ref, cs1m_ref, cinv_ref,
                          w1ti_ref, w1tg_ref, b1_ref, w2t_ref, b2_ref,
                          mse_ref, y0_ref):
    """Fused forward; everything laid out (rows, B*HW) with B*HW = 512 lanes.

       inp_ref  : (C, N)      input_image / 255
       gt_ref   : (C, N)      gt_images / 255 * 2 - 1
       noise_ref: (C, N)      N(0,1) noise
       csab_ref : (C, N)      sqrt_alphas_bar[t_b]            (per-batch, lane-broadcast)
       cs1m_ref : (C, N)      sqrt_one_minus_alphas_bar[t_b]
       cinv_ref : (C, N)      1 / (255 * sqrt_alphas_bar[t_b])
       w1ti_ref : (HIDDEN, C) layer-1 weights for the input_image channels (transposed)
       w1tg_ref : (HIDDEN, C) layer-1 weights for the y_t channels (transposed)
       b1_ref   : (HIDDEN, N) layer-1 bias + per-batch time embedding (lane-broadcast)
       w2t_ref  : (C, HIDDEN) layer-2 weights (transposed)
       b2_ref   : (C, N)      layer-2 bias (lane-broadcast)
       mse_ref  : (C, N)      per-element MSE (== loss; stage losses are external stubs)
       y0_ref   : (C, N)      y_0_pred (consumed by the external stage losses)
    """
    noise = noise_ref[...]
    cs1m = cs1m_ref[...]

    # q(y_t | y_0): y_t = sqrt_ab[t]*gt + sqrt_1mab[t]*noise  -- batch on lanes.
    y_t = csab_ref[...] * gt_ref[...] + cs1m * noise                    # (C, N)

    # Synthetic model on cat([input_image, y_t], channel dim).
    # TODO(synk): the real `model` (UNet) passed into GaussianDiffusionTrainer is
    # an external module; this is a deterministic synthetic per-pixel MLP stand-in.
    # Layer 1 on the MXU: W1^T @ cat(inp, y_t), done as two K=C matmuls (one per
    # half of the channel concat) -> lane-dense (HIDDEN, N) activations.
    h = jnp.dot(w1ti_ref[...], inp_ref[...], preferred_element_type=jnp.float32)
    h = h + jnp.dot(w1tg_ref[...], y_t, preferred_element_type=jnp.float32)
    h = jnp.maximum(h + b1_ref[...], 0.0)                               # (HIDDEN, N)

    # Layer 2 on the MXU, one fused matmul over all batches, lane-dense output.
    pred = jnp.dot(w2t_ref[...], h, preferred_element_type=jnp.float32) + b2_ref[...]

    # mse_loss = F.mse_loss(noise_pred, noise, reduction='none')
    diff = pred - noise
    mse_ref[...] = diff * diff

    # y_0_pred = 1/sqrt_ab[t] * (y_t - sqrt_1mab[t]*noise_pred) / 255
    # (the /255 from the reference forward is folded into cinv).
    y0_ref[...] = cinv_ref[...] * (y_t - cs1m * pred)


# --------------------------- pallas wrapper --------------------------------
def fused_trainer_call(inp_cn, gt_cn, noise_cn, csab, cs1m, cinv,
                       w1ti, w1tg, b1_full, w2t, b2_full):
    img = jax.ShapeDtypeStruct((C, N), jnp.float32)

    def full(shape):
        return pl.BlockSpec(shape, lambda i: (0,) * len(shape))

    return pl.pallas_call(
        _fused_trainer_kernel,
        grid=(1,),
        in_specs=[
            full((C, N)),            # input_image (normalized)
            full((C, N)),            # gt_images  (normalized)
            full((C, N)),            # noise
            full((C, N)),            # sqrt_ab[t]      plane
            full((C, N)),            # sqrt_1mab[t]    plane
            full((C, N)),            # 1/(255*sqrt_ab) plane
            full((HIDDEN, C)),       # W1^T (input half)
            full((HIDDEN, C)),       # W1^T (y_t half)
            full((HIDDEN, N)),       # b1 + time embedding, lane-broadcast
            full((C, HIDDEN)),       # W2^T
            full((C, N)),            # b2, lane-broadcast
        ],
        out_specs=[full((C, N)), full((C, N))],
        out_shape=(img, img),
        compiler_params=pltpu.CompilerParams(
            dimension_semantics=("arbitrary",)),
    )(inp_cn, gt_cn, noise_cn, csab, cs1m, cinv, w1ti, w1tg, b1_full, w2t, b2_full)


# ----------------------- trainer setup / glue ------------------------------
def make_diffusion_buffers():
    # Matches: linspace(beta_1, beta_T, T).double(); cumprod; sqrt  (float64 host math)
    betas = np.linspace(BETA_1, BETA_T, T, dtype=np.float64)
    alphas = 1.0 - betas
    alphas_bar = np.cumprod(alphas)
    return (jnp.asarray(np.sqrt(alphas_bar), jnp.float32),
            jnp.asarray(np.sqrt(1.0 - alphas_bar), jnp.float32))


def make_model_params():
    # Deterministic synthetic weights (no checkpoint load).
    k1, k2 = jax.random.split(jax.random.PRNGKey(42))
    w1 = jax.random.normal(k1, (2 * C, HIDDEN), jnp.float32) * 0.1
    b1 = jnp.zeros((1, HIDDEN), jnp.float32)
    w2 = jax.random.normal(k2, (HIDDEN, C), jnp.float32) * 0.1
    b2 = jnp.zeros((1, C), jnp.float32)
    return w1, b1, w2, b2


def time_embedding(t):
    # Sinusoidal embedding of timestep, (B, HIDDEN).
    half = HIDDEN // 2
    freqs = jnp.exp(-jnp.log(10000.0) * jnp.arange(half, dtype=jnp.float32) / half)
    ang = t.astype(jnp.float32)[:, None] * freqs[None, :]
    return jnp.concatenate([jnp.sin(ang), jnp.cos(ang)], axis=-1)


def _to_cn(x_bchw):
    # (B, C, H, W) -> (C, B*HW): channels on sublanes, batch*pixels on lanes.
    return jnp.transpose(x_bchw.reshape(B, C, HW), (1, 0, 2)).reshape(C, N)


def _from_cn(x_cn):
    # (C, B*HW) -> (B, C, H, W)
    return jnp.transpose(x_cn.reshape(C, B, HW), (1, 0, 2)).reshape(B, C, H, W)


def _bcast_coef(v):
    # (B,) per-batch scalar -> (C, B*HW) lane-broadcast plane.
    return jnp.broadcast_to(v.astype(jnp.float32)[None, :, None], (C, B, HW)).reshape(C, N)


@partial(jax.jit, static_argnames=("stage",))
def gaussian_diffusion_trainer_forward(gt_u8, inp_u8, stage, key, params,
                                       sqrt_ab, sqrt_1mab):
    del stage  # only selects external (stubbed) stage losses
    w1, b1, w2, b2 = params
    k_t, k_noise, k_ctx = jax.random.split(key, 3)

    # Algorithm 1: random timesteps + gaussian noise (noise drawn directly in the
    # kernel's (C, B*HW) layout -- i.i.d. N(0,1), so layout choice is semantics-free).
    t = jax.random.randint(k_t, (B,), 0, T)
    noise_cn = jax.random.normal(k_noise, (C, N), jnp.float32)

    # Normalization done in XLA (cheap), kernel sees f32 only.
    inp_cn = _to_cn(inp_u8.astype(jnp.float32) / 255.0)
    gt_cn = _to_cn(gt_u8.astype(jnp.float32) / 255.0 * 2.0 - 1.0)

    # extract(): gather coefficients at t, pre-broadcast to lane-dense planes.
    sab_t = jnp.take(sqrt_ab, t, axis=0)
    s1m_t = jnp.take(sqrt_1mab, t, axis=0)
    csab = _bcast_coef(sab_t)
    cs1m = _bcast_coef(s1m_t)
    cinv = _bcast_coef((1.0 / sab_t) / 255.0)   # fold the reference /255 into 1/sqrt_ab

    # Time embedding folded into the first-layer bias, pre-broadcast per batch segment.
    b1_eff = time_embedding(t) + b1                                   # (B, HIDDEN)
    b1_full = jnp.broadcast_to(b1_eff.T[:, :, None], (HIDDEN, B, HW)).reshape(HIDDEN, N)

    # Lane-dense weight / bias layouts.
    w1ti = w1[:C].T                                                   # (HIDDEN, C)
    w1tg = w1[C:].T                                                   # (HIDDEN, C)
    w2t = w2.T                                                        # (C, HIDDEN)
    b2_full = jnp.broadcast_to(b2.reshape(C, 1), (C, N))              # (C, N)

    # 2% context-zero branch of the original forward.
    _context_zero = jax.random.uniform(k_ctx, ()) < 0.02  # noqa: F841
    # TODO(synk): context_zero conditioning lives inside the external UNet.

    mse_cn, y0_cn = fused_trainer_call(
        inp_cn, gt_cn, noise_cn, csab, cs1m, cinv,
        w1ti, w1tg, b1_full, w2t, b2_full)

    mse_loss = _from_cn(mse_cn)
    loss = mse_loss                     # external stage losses stubbed -> loss == mse_loss
    _y_0_pred = _from_cn(y0_cn)         # noqa: F841 (input to external stage losses)
    # TODO(synk): perceptual_vgg / perceptual_dino / ms-ssim / charbonnier /
    # angular color losses are external modules not defined in the source file.

    zero = jnp.zeros((), jnp.float32)
    # [loss, mse_loss, perceptual_vgg, perceptual_dino, msssim, charbonnier, col_loss]
    return [loss, mse_loss, zero, zero, zero, zero, zero]


# --------------------------------- main -----------------------------------
if __name__ == "__main__":
    sqrt_ab, sqrt_1mab = make_diffusion_buffers()
    params = make_model_params()

    key = jax.random.PRNGKey(0)
    k_gt, k_in, k_fwd = jax.random.split(key, 3)
    gt_images = jax.random.randint(k_gt, (B, C, H, W), 0, 256,
                                   dtype=jnp.int32).astype(jnp.uint8)
    input_image = jax.random.randint(k_in, (B, C, H, W), 0, 256,
                                     dtype=jnp.int32).astype(jnp.uint8)

    outs = gaussian_diffusion_trainer_forward(
        gt_images, input_image, stage=0, key=k_fwd, params=params,
        sqrt_ab=sqrt_ab, sqrt_1mab=sqrt_1mab)
    outs = jax.block_until_ready(outs)

    assert outs[0].shape == (B, C, H, W)
    assert outs[1].shape == (B, C, H, W)
    assert bool(jnp.isfinite(outs[0]).all())
    assert bool(jnp.isfinite(outs[1]).all())
    print("KERNEL_OK")
</pallas_src>

<mosaic_0001>
module attributes {stable_mosaic.version = 11 : i64} {
  func.func @_fused_trainer_kernel(%arg0: i32, %arg1: memref<4x512xf32, #tpu.memory_space<vmem>>, %arg2: memref<4x512xf32, #tpu.memory_space<vmem>>, %arg3: memref<4x512xf32, #tpu.memory_space<vmem>>, %arg4: memref<4x512xf32, #tpu.memory_space<vmem>>, %arg5: memref<4x512xf32, #tpu.memory_space<vmem>>, %arg6: memref<4x512xf32, #tpu.memory_space<vmem>>, %arg7: memref<32x4xf32, #tpu.memory_space<vmem>>, %arg8: memref<32x4xf32, #tpu.memory_space<vmem>>, %arg9: memref<32x512xf32, #tpu.memory_space<vmem>>, %arg10: memref<4x32xf32, #tpu.memory_space<vmem>>, %arg11: memref<4x512xf32, #tpu.memory_space<vmem>>, %arg12: memref<4x512xf32, #tpu.memory_space<vmem>>, %arg13: memref<4x512xf32, #tpu.memory_space<vmem>>) attributes {dimension_semantics = [#tpu.dimension_semantics<arbitrary>], iteration_bounds = array<i64: 1>, scalar_prefetch = 0 : i64, scratch_operands = 0 : i64, tpu.core_type = #tpu.core_type<tc>, window_params = [{pipeline_mode = #tpu.pipeline_mode<synchronous>, transform_indices = @transform_0, window_bounds = array<i64: 4, 512>}, {pipeline_mode = #tpu.pipeline_mode<synchronous>, transform_indices = @transform_1, window_bounds = array<i64: 4, 512>}, {pipeline_mode = #tpu.pipeline_mode<synchronous>, transform_indices = @transform_2, window_bounds = array<i64: 4, 512>}, {pipeline_mode = #tpu.pipeline_mode<synchronous>, transform_indices = @transform_3, window_bounds = array<i64: 4, 512>}, {pipeline_mode = #tpu.pipeline_mode<synchronous>, transform_indices = @transform_4, window_bounds = array<i64: 4, 512>}, {pipeline_mode = #tpu.pipeline_mode<synchronous>, transform_indices = @transform_5, window_bounds = array<i64: 4, 512>}, {pipeline_mode = #tpu.pipeline_mode<synchronous>, transform_indices = @transform_6, window_bounds = array<i64: 32, 4>}, {pipeline_mode = #tpu.pipeline_mode<synchronous>, transform_indices = @transform_7, window_bounds = array<i64: 32, 4>}, {pipeline_mode = #tpu.pipeline_mode<synchronous>, transform_indices = @transform_8, window_bounds = array<i64: 32, 512>}, {pipeline_mode = #tpu.pipeline_mode<synchronous>, transform_indices = @transform_9, window_bounds = array<i64: 4, 32>}, {pipeline_mode = #tpu.pipeline_mode<synchronous>, transform_indices = @transform_10, window_bounds = array<i64: 4, 512>}, {pipeline_mode = #tpu.pipeline_mode<synchronous>, transform_indices = @transform_11, window_bounds = array<i64: 4, 512>}, {pipeline_mode = #tpu.pipeline_mode<synchronous>, transform_indices = @transform_12, window_bounds = array<i64: 4, 512>}]} {
    %c0 = arith.constant 0 : index
    %c0_0 = arith.constant 0 : index
    %0 = vector.load %arg3[%c0, %c0_0] : memref<4x512xf32, #tpu.memory_space<vmem>>, vector<4x512xf32>
    %c0_1 = arith.constant 0 : index
    %c0_2 = arith.constant 0 : index
    %1 = vector.load %arg5[%c0_1, %c0_2] : memref<4x512xf32, #tpu.memory_space<vmem>>, vector<4x512xf32>
    %c0_3 = arith.constant 0 : index
    %c0_4 = arith.constant 0 : index
    %2 = vector.load %arg4[%c0_3, %c0_4] : memref<4x512xf32, #tpu.memory_space<vmem>>, vector<4x512xf32>
    %c0_5 = arith.constant 0 : index
    %c0_6 = arith.constant 0 : index
    %3 = vector.load %arg2[%c0_5, %c0_6] : memref<4x512xf32, #tpu.memory_space<vmem>>, vector<4x512xf32>
    %4 = arith.mulf %2, %3 : vector<4x512xf32>
    %5 = arith.mulf %1, %0 : vector<4x512xf32>
    %6 = arith.addf %4, %5 : vector<4x512xf32>
    %c0_7 = arith.constant 0 : index
    %c0_8 = arith.constant 0 : index
    %7 = vector.load %arg7[%c0_7, %c0_8] : memref<32x4xf32, #tpu.memory_space<vmem>>, vector<32x4xf32>
    %c0_9 = arith.constant 0 : index
    %c0_10 = arith.constant 0 : index
    %8 = vector.load %arg1[%c0_9, %c0_10] : memref<4x512xf32, #tpu.memory_space<vmem>>, vector<4x512xf32>
    %cst = arith.constant dense<0.000000e+00> : vector<32x512xf32>
    %9 = tpu.matmul %7, %8, %cst {dimension_numbers = #tpu.dot_dimension_numbers<[1], [0], [0], [1], [0, 0, 1, 1], [], []>} : vector<32x4xf32>, vector<4x512xf32>, vector<32x512xf32> -> vector<32x512xf32>
    %c0_11 = arith.constant 0 : index
    %c0_12 = arith.constant 0 : index
    %10 = vector.load %arg8[%c0_11, %c0_12] : memref<32x4xf32, #tpu.memory_space<vmem>>, vector<32x4xf32>
    %cst_13 = arith.constant dense<0.000000e+00> : vector<32x512xf32>
    %11 = tpu.matmul %10, %6, %cst_13 {dimension_numbers = #tpu.dot_dimension_numbers<[1], [0], [0], [1], [0, 0, 1, 1], [], []>} : vector<32x4xf32>, vector<4x512xf32>, vector<32x512xf32> -> vector<32x512xf32>
    %12 = arith.addf %9, %11 : vector<32x512xf32>
    %c0_14 = arith.constant 0 : index
    %c0_15 = arith.constant 0 : index
    %13 = vector.load %arg9[%c0_14, %c0_15] : memref<32x512xf32, #tpu.memory_space<vmem>>, vector<32x512xf32>
    %14 = arith.addf %12, %13 : vector<32x512xf32>
    %cst_16 = arith.constant 0.000000e+00 : f32
    %15 = vector.broadcast %cst_16 : f32 to vector<32x512xf32>
    %16 = arith.maximumf %14, %15 : vector<32x512xf32>
    %c0_17 = arith.constant 0 : index
    %c0_18 = arith.constant 0 : index
    %17 = vector.load %arg10[%c0_17, %c0_18] : memref<4x32xf32, #tpu.memory_space<vmem>>, vector<4x32xf32>
    %cst_19 = arith.constant dense<0.000000e+00> : vector<4x512xf32>
    %18 = tpu.matmul %17, %16, %cst_19 {dimension_numbers = #tpu.dot_dimension_numbers<[1], [0], [0], [1], [0, 0, 1, 1], [], []>} : vector<4x32xf32>, vector<32x512xf32>, vector<4x512xf32> -> vector<4x512xf32>
    %c0_20 = arith.constant 0 : index
    %c0_21 = arith.constant 0 : index
    %19 = vector.load %arg11[%c0_20, %c0_21] : memref<4x512xf32, #tpu.memory_space<vmem>>, vector<4x512xf32>
    %20 = arith.addf %18, %19 : vector<4x512xf32>
    %21 = arith.subf %20, %0 : vector<4x512xf32>
    %22 = arith.mulf %21, %21 : vector<4x512xf32>
    %c0_22 = arith.constant 0 : index
    %c0_23 = arith.constant 0 : index
    %23 = vector.load %arg12[%c0_22, %c0_23] : memref<4x512xf32, #tpu.memory_space<vmem>>, vector<4x512xf32>
    tpu.vector_store %arg12[%c0_22, %c0_23], %22 {strides = array<i32>} : memref<4x512xf32, #tpu.memory_space<vmem>>, vector<4x512xf32>,
    %c0_24 = arith.constant 0 : index
    %c0_25 = arith.constant 0 : index
    %24 = vector.load %arg6[%c0_24, %c0_25] : memref<4x512xf32, #tpu.memory_space<vmem>>, vector<4x512xf32>
    %25 = arith.mulf %1, %20 : vector<4x512xf32>
    %26 = arith.subf %6, %25 : vector<4x512xf32>
    %27 = arith.mulf %24, %26 : vector<4x512xf32>
    %c0_26 = arith.constant 0 : index
    %c0_27 = arith.constant 0 : index
    %28 = vector.load %arg13[%c0_26, %c0_27] : memref<4x512xf32, #tpu.memory_space<vmem>>, vector<4x512xf32>
    tpu.vector_store %arg13[%c0_26, %c0_27], %27 {strides = array<i32>} : memref<4x512xf32, #tpu.memory_space<vmem>>, vector<4x512xf32>,
    return
  }
  func.func @transform_0(%arg0: i32) -> (i32, i32) {
    %c0_i32 = arith.constant 0 : i32
    %c0_i32_0 = arith.constant 0 : i32
    %c0_i32_1 = arith.constant 0 : i32
    return %c0_i32, %c0_i32_0 : i32, i32
  }
  func.func @transform_1(%arg0: i32) -> (i32, i32) {
    %c0_i32 = arith.constant 0 : i32
    %c0_i32_0 = arith.constant 0 : i32
    %c0_i32_1 = arith.constant 0 : i32
    return %c0_i32, %c0_i32_0 : i32, i32
  }
  func.func @transform_2(%arg0: i32) -> (i32, i32) {
    %c0_i32 = arith.constant 0 : i32
    %c0_i32_0 = arith.constant 0 : i32
    %c0_i32_1 = arith.constant 0 : i32
    return %c0_i32, %c0_i32_0 : i32, i32
  }
  func.func @transform_3(%arg0: i32) -> (i32, i32) {
    %c0_i32 = arith.constant 0 : i32
    %c0_i32_0 = arith.constant 0 : i32
    %c0_i32_1 = arith.constant 0 : i32
    return %c0_i32, %c0_i32_0 : i32, i32
  }
  func.func @transform_4(%arg0: i32) -> (i32, i32) {
    %c0_i32 = arith.constant 0 : i32
    %c0_i32_0 = arith.constant 0 : i32
    %c0_i32_1 = arith.constant 0 : i32
    return %c0_i32, %c0_i32_0 : i32, i32
  }
  func.func @transform_5(%arg0: i32) -> (i32, i32) {
    %c0_i32 = arith.constant 0 : i32
    %c0_i32_0 = arith.constant 0 : i32
    %c0_i32_1 = arith.constant 0 : i32
    return %c0_i32, %c0_i32_0 : i32, i32
  }
  func.func @transform_6(%arg0: i32) -> (i32, i32) {
    %c0_i32 = arith.constant 0 : i32
    %c0_i32_0 = arith.constant 0 : i32
    %c0_i32_1 = arith.constant 0 : i32
    return %c0_i32, %c0_i32_0 : i32, i32
  }
  func.func @transform_7(%arg0: i32) -> (i32, i32) {
    %c0_i32 = arith.constant 0 : i32
    %c0_i32_0 = arith.constant 0 : i32
    %c0_i32_1 = arith.constant 0 : i32
    return %c0_i32, %c0_i32_0 : i32, i32
  }
  func.func @transform_8(%arg0: i32) -> (i32, i32) {
    %c0_i32 = arith.constant 0 : i32
    %c0_i32_0 = arith.constant 0 : i32
    %c0_i32_1 = arith.constant 0 : i32
    return %c0_i32, %c0_i32_0 : i32, i32
  }
  func.func @transform_9(%arg0: i32) -> (i32, i32) {
    %c0_i32 = arith.constant 0 : i32
    %c0_i32_0 = arith.constant 0 : i32
    %c0_i32_1 = arith.constant 0 : i32
    return %c0_i32, %c0_i32_0 : i32, i32
  }
  func.func @transform_10(%arg0: i32) -> (i32, i32) {
    %c0_i32 = arith.constant 0 : i32
    %c0_i32_0 = arith.constant 0 : i32
    %c0_i32_1 = arith.constant 0 : i32
    return %c0_i32, %c0_i32_0 : i32, i32
  }
  func.func @transform_11(%arg0: i32) -> (i32, i32) {
    %c0_i32 = arith.constant 0 : i32
    %c0_i32_0 = arith.constant 0 : i32
    %c0_i32_1 = arith.constant 0 : i32
    return %c0_i32, %c0_i32_0 : i32, i32
  }
  func.func @transform_12(%arg0: i32) -> (i32, i32) {
    %c0_i32 = arith.constant 0 : i32
    %c0_i32_0 = arith.constant 0 : i32
    %c0_i32_1 = arith.constant 0 : i32
    return %c0_i32, %c0_i32_0 : i32, i32
  }
}

</mosaic_0001>

<bundles_post_ra>
// kernel: gaussian_diffusion_trainer_forward.3
= control target key start
LH: loop header
LB: loop body
LE: loop exit
PB: predicated region body
PF: predicated region fallthrough
CT: control target
= control target key end

     0   :  { %v790_v7 = vmov 0.0   ;;  %vm82_vm0 = vcmask 1043456   ;;  %s1060_s0 = inlined_call_operand.vmem [shape: f32[4,512], index: 0, kind: input, shape index: {}]   ;;  %s1061_s1 = inlined_call_operand.vmem [shape: f32[4,512], index: 1, kind: input, shape index: {}]   ;;  %s1062_s2 = inlined_call_operand.vmem [shape: f32[4,512], index: 2, kind: input, shape index: {}]   ;;  %s1063_s3 = inlined_call_operand.vmem [shape: f32[4,512], index: 3, kind: input, shape index: {}]   ;;  %s1064_s4 = inlined_call_operand.vmem [shape: f32[4,512], index: 4, kind: input, shape index: {}]   ;;  %s1065_s5 = inlined_call_operand.vmem [shape: f32[4,512], index: 5, kind: input, shape index: {}]   ;;  %s1066_s6 = inlined_call_operand.vmem [shape: f32[32,4], index: 6, kind: input, shape index: {}]   ;;  %s1067_s7 = inlined_call_operand.vmem [shape: f32[32,4], index: 7, kind: input, shape index: {}]   ;;  %s1068_s8 = inlined_call_operand.vmem [shape: f32[32,512], index: 8, kind: input, shape index: {}]   ;;  %s1069_s9 = inlined_call_operand.vmem [shape: f32[4,32], index: 9, kind: input, shape index: {}]   ;;  %s1070_s10 = inlined_call_operand.vmem [shape: f32[4,512], index: 10, kind: input, shape index: {}]   ;;  %s1071_s11 = inlined_call_operand.vmem [shape: f32[4,512], index: 11, kind: output, shape index: {0}]   ;;  %s1072_s12 = inlined_call_operand.hbm [shape: f32[4,512], index: 12, kind: output, shape index: {1}]  }
   0x1   :  { %v860_v0 = vld [vmem:[%s1062_s2] sm:$0xff]  ;;  %v878_v5 = vld [vmem:[%s1062_s2 + $0x8] sm:$0xff]  ;;  %155 = vmatprep.mubr.f32.mxu0 %v790_v7  ;;  %244 = vmatprep.mubr.f32.mxu1 %v790_v7 }
   0x2   :  { %v865_v1 = vld [vmem:[%s1064_s4] sm:$0xff]  ;;  %v883_v6 = vld [vmem:[%s1064_s4 + $0x8] sm:$0xff] }
   0x3   :  { %v45_v2 = vld [vmem:[%s1063_s3] sm:$0xff]  ;;  %v51_v4 = vmul.f32 %v865_v1, %v860_v0  ;;  %v46_v9 = vld [vmem:[%s1063_s3 + $0x8] sm:$0xff]  ;;  %v52_v11 = vmul.f32 %v883_v6, %v878_v5 }
   0x4   :  { %v47_v3 = vld [vmem:[%s1061_s1] sm:$0xff]  ;;  %v48_v10 = vld [vmem:[%s1061_s1 + $0x8] sm:$0xff] }
   0x5   :  { %v49_v8 = vmul.f32 %v47_v3, %v45_v2  ;;  %v50_v12 = vmul.f32 %v48_v10, %v46_v9  ;;  %v59_v15 = vld [vmem:[%s1060_s0] sm:$0xff]  ;;  %v60_v17 = vld [vmem:[%s1060_s0 + $0x8] sm:$0xff] }
   0x7   :  { %v895_v13 = vadd.f32 %v51_v4, %v49_v8  ;;  %v897_v14 = vadd.f32 %v52_v11, %v50_v12 }
   0x9   :  { %v67_v16 = vcombine.high %v895_v13, %v895_v13 }
   0xa   :  { %18 = vsyncpa [#allocation3], 0  ;;  %v68_v18 = vcombine.high %v897_v14, %v897_v14  ;;  %v61_v19 = vld [vmem:[%s1067_s7] sm:$0xff]  ;;  %vm69_vm1 = vcmask 31744   ;;  %v271_v20 = vcombine.high %v59_v15, %v59_v15  ;;  %v272_v21 = vcombine.high %v60_v17, %v60_v17  ;;  %v62_v22 = vld [vmem:[%s1067_s7 + $0x8] sm:$0xff]  ;;  %s791_s23 = smov [#allocation2]  }
   0xb   :  { %734 = vmatprep.subr.msk.mxu0 %vm82_vm0, %v67_v16  ;;  %v63_v23 = vld [vmem:[%s1067_s7 + $0x10] sm:$0xff]  ;;  %v64_v24 = vld [vmem:[%s1067_s7 + $0x18] sm:$0xff]  ;;  %v55_v25 = vld [vmem:[%s1066_s6] sm:$0xff]  ;;  %vm528_vm2 = vcmask 261120   ;;  %s724_s24 = sshll.u32 %s791_s23, 4  ;;  %s725_s24 = int_to_ptr.vmem [resolvable:$true] %s724_s24 }
   0xc   :  { %740 = vmatprep.subr.msk.mxu1 %vm82_vm0, %v68_v18  ;;  %735 = vmatpush1.msk.msra.mxu0 %vm82_vm0, %v895_v13  ;;  %v56_v26 = vld [vmem:[%s1066_s6 + $0x8] sm:$0xff]  ;;  %v57_v27 = vld [vmem:[%s1066_s6 + $0x10] sm:$0xff]  ;;  %v58_v28 = vld [vmem:[%s1066_s6 + $0x18] sm:$0xff]  ;;  %p773_p1 = scmp.lt.s32.totalorder %s725_s24, %s725_s24 }
   0xd   :  { %741 = vmatpush1.msk.msra.mxu1 %vm82_vm0, %v897_v14  ;;  %736 = vmatmul.mubr.msk.f32.vlgmr.msra.gmra.mxu0 %vm69_vm1, %v61_v19  ;;  %v483_v60 = vld [vmem:[%s1068_s8 + $0x60] sm:$0xff]  ;;  %v480_v2 = vld [vmem:[%s1068_s8 + $0x48] sm:$0xff]  ;;  %v482_v16 = vld [vmem:[%s1068_s8 + $0x58] sm:$0xff] }
   0xe   :  { %742 = vmatmul.mubr.msk.f32.vlgmr.msra.gmra.mxu1 %vm69_vm1, %v61_v19  ;;  %161 = vmatprep.mubr.f32.mxu0 %v790_v7  ;;  %v484_v9 = vld [vmem:[%s1068_s8 + $0x68] sm:$0xff]  ;;  %v479_v12 = vld [vmem:[%s1068_s8 + $0x40] sm:$0xff]  ;;  %v486_v19 = vld [vmem:[%s1068_s8 + $0x78] sm:$0xff] }
   0xf   :  { %250 = vmatprep.mubr.f32.mxu1 %v790_v7  ;;  %746 = vmatprep.subr.msk.mxu0 %vm82_vm0, %v271_v20 }
  0x10   :  { %752 = vmatprep.subr.msk.mxu1 %vm82_vm0, %v272_v21  ;;  %747 = vmatpush1.msk.msra.mxu0 %vm82_vm0, %v59_v15  ;;  %v476_v21 = vld [vmem:[%s1068_s8 + $0x28] sm:$0xff] }
  0x11   :  { %737 = vmatmul.mubr.msk.f32.gmra.mxu0 %vm69_vm1, %v62_v22  ;;  %753 = vmatpush1.msk.msra.mxu1 %vm82_vm0, %v60_v17 }
  0x12   :  { %743 = vmatmul.mubr.msk.f32.gmra.mxu1 %vm69_vm1, %v62_v22  ;;  %167 = vmatprep.mubr.f32.mxu0 %v790_v7 }
  0x13   :  { %256 = vmatprep.mubr.f32.mxu1 %v790_v7 }
  0x15   :  { %738 = vmatmul.mubr.msk.f32.gmra.mxu0 %vm69_vm1, %v63_v23 }
  0x16   :  { %744 = vmatmul.mubr.msk.f32.gmra.mxu1 %vm69_vm1, %v63_v23  ;;  %173 = vmatprep.mubr.f32.mxu0 %v790_v7  ;;  %v481_v23 = vld [vmem:[%s1068_s8 + $0x50] sm:$0xff] }
  0x17   :  { %262 = vmatprep.mubr.f32.mxu1 %v790_v7 }
  0x19   :  { %739 = vmatmul.mubr.msk.f32.gmra.mxu0 %vm69_vm1, %v64_v24 }
  0x1a   :  { %745 = vmatmul.mubr.msk.f32.gmra.mxu1 %vm69_vm1, %v64_v24  ;;  %357 = vmatprep.mubr.f32.mxu0 %v790_v7 }
  0x1b   :  { %446 = vmatprep.mubr.f32.mxu1 %v790_v7 }
  0x1d   :  { %748 = vmatmul.mubr.msk.f32.vlgmr.msra.gmra.mxu0 %vm69_vm1, %v55_v25 }
  0x1e   :  { %754 = vmatmul.mubr.msk.f32.vlgmr.msra.gmra.mxu1 %vm69_vm1, %v55_v25  ;;  %363 = vmatprep.mubr.f32.mxu0 %v790_v7 }
  0x1f   :  { %452 = vmatprep.mubr.f32.mxu1 %v790_v7 }
  0x21   :  { %749 = vmatmul.mubr.msk.f32.gmra.mxu0 %vm69_vm1, %v56_v26 }
  0x22   :  { %755 = vmatmul.mubr.msk.f32.gmra.mxu1 %vm69_vm1, %v56_v26  ;;  %369 = vmatprep.mubr.f32.mxu0 %v790_v7  ;;  %v475_v26 = vld [vmem:[%s1068_s8 + $0x20] sm:$0xff] }
  0x23   :  { %458 = vmatprep.mubr.f32.mxu1 %v790_v7 }
  0x25   :  { %750 = vmatmul.mubr.msk.f32.gmra.mxu0 %vm69_vm1, %v57_v27 }
  0x26   :  { %756 = vmatmul.mubr.msk.f32.gmra.mxu1 %vm69_vm1, %v57_v27  ;;  %375 = vmatprep.mubr.f32.mxu0 %v790_v7 }
  0x27   :  { %464 = vmatprep.mubr.f32.mxu1 %v790_v7 }
  0x29   :  { %751 = vmatmul.mubr.msk.f32.gmra.mxu0 %vm69_vm1, %v58_v28 }
  0x2a   :  { %757 = vmatmul.mubr.msk.f32.gmra.mxu1 %vm69_vm1, %v58_v28  ;;  %596 = vmatprep.mubr.f32.mxu0 %v790_v7  ;;  %v478_v28 = vld [vmem:[%s1068_s8 + $0x38] sm:$0xff] }
  0x2b   :  { %667 = vmatprep.mubr.f32.mxu1 %v790_v7  ;;  %v485_v7 = vld [vmem:[%s1068_s8 + $0x70] sm:$0xff] }
  0xcd   :  { %v157_v29 = vpop.f32.mrf.mxu0 }
  0xce   :  { %v975_v30 = vpop.f32.mrf.mxu1 }
  0xcf   :  { %v159_v31 = vpop.f32.mrf.mxu0 }
  0xd0   :  { %v248_v32 = vpop.f32.mrf.mxu1 }
  0xd1   :  { %v163_v33 = vpop.f32.mrf.mxu0 }
  0xd2   :  { %v252_v34 = vpop.f32.mrf.mxu1 }
  0xd3   :  { %v165_v35 = vpop.f32.mrf.mxu0 }
  0xd4   :  { %v254_v36 = vpop.f32.mrf.mxu1 }
  0xd5   :  { %v169_v37 = vpop.f32.mrf.mxu0 }
  0xd6   :  { %v258_v38 = vpop.f32.mrf.mxu1 }
  0xd7   :  { %v171_v39 = vpop.f32.mrf.mxu0 }
  0xd8   :  { %v260_v40 = vpop.f32.mrf.mxu1 }
  0xd9   :  { %v175_v41 = vpop.f32.mrf.mxu0 }
  0xda   :  { %v264_v42 = vpop.f32.mrf.mxu1 }
  0xdb   :  { %v177_v43 = vpop.f32.mrf.mxu0 }
  0xdc   :  { %v266_v44 = vpop.f32.mrf.mxu1 }
  0xdd   :  { %v359_v45 = vpop.f32.mrf.mxu0 }
  0xde   :  { %v448_v46 = vpop.f32.mrf.mxu1  ;;  %v360_v62 = vadd.f32 %v359_v45, %v157_v29  ;;  %v473_v45 = vld [vmem:[%s1068_s8 + $0x10] sm:$0xff] }
  0xdf   :  { %v361_v47 = vpop.f32.mrf.mxu0 }
  0xe0   :  { %v450_v48 = vpop.f32.mrf.mxu1  ;;  %v362_v10 = vadd.f32 %v361_v47, %v159_v31 }
  0xe1   :  { %v365_v49 = vpop.f32.mrf.mxu0 }
  0xe2   :  { %v454_v50 = vpop.f32.mrf.mxu1  ;;  %v366_v20 = vadd.f32 %v365_v49, %v163_v33 }
  0xe3   :  { %v367_v51 = vpop.f32.mrf.mxu0  ;;  %v455_v27 = vadd.f32 %v454_v50, %v252_v34  ;;  %v471_v34 = vld [vmem:[%s1068_s8] sm:$0xff] }
  0xe4   :  { %v456_v52 = vpop.f32.mrf.mxu1  ;;  %v368_v11 = vadd.f32 %v367_v51, %v165_v35  ;;  %v472_v35 = vld [vmem:[%s1068_s8 + $0x8] sm:$0xff]  ;;  %v491_v47 = vadd.f32 %v475_v26, %v366_v20  ;;  %v677_v20 = vcombine.high %v878_v5, %v878_v5 }
  0xe5   :  { %v371_v53 = vpop.f32.mrf.mxu0  ;;  %v457_v22 = vadd.f32 %v456_v52, %v254_v36  ;;  %v451_v36 = vadd.f32 %v450_v48, %v248_v32  ;;  %v488_v51 = vadd.f32 %v472_v35, %v362_v10 }
  0xe6   :  { %v460_v54 = vpop.f32.mrf.mxu1  ;;  %v372_v63 = vadd.f32 %v371_v53, %v169_v37  ;;  %v477_v37 = vld [vmem:[%s1068_s8 + $0x30] sm:$0xff] }
  0xe7   :  { %v373_v55 = vpop.f32.mrf.mxu0  ;;  %v461_v15 = vadd.f32 %v460_v54, %v258_v38  ;;  %v494_v48 = vadd.f32 %v478_v28, %v457_v22  ;;  %v493_v52 = vadd.f32 %v477_v37, %v455_v27 }
  0xe8   :  { %v462_v56 = vpop.f32.mrf.mxu1  ;;  %v374_v58 = vadd.f32 %v373_v55, %v171_v39  ;;  %v495_v38 = vadd.f32 %v479_v12, %v372_v63  ;;  %v504_v63 = vmax.f32 %v488_v51, 0.0 }
  0xe9   :  { %v377_v57 = vpop.f32.mrf.mxu0  ;;  %v463_v3 = vadd.f32 %v462_v56, %v260_v40 }
  0xea   :  { %v378_v59 = vadd.f32 %v377_v57, %v175_v41  ;;  %v466_v61 = vpop.f32.mrf.mxu1  ;;  %v496_v29 = vadd.f32 %v480_v2, %v374_v58  ;;  %v449_v41 = vadd.f32 %v448_v46, %v975_v30  ;;  %v487_v30 = vadd.f32 %v471_v34, %v360_v62 }
  0xeb   :  { %v467_v4 = vadd.f32 %v466_v61, %v264_v42  ;;  %v379_v8 = vpop.f32.mrf.mxu0  ;;  %v498_v39 = vadd.f32 %v482_v16, %v463_v3  ;;  %v474_v42 = vld [vmem:[%s1068_s8 + $0x18] sm:$0xff]  ;;  %v511_v55 = vmax.f32 %v495_v38, 0.0  ;;  %v510_v61 = vmax.f32 %v494_v48, 0.0 }
  0xec   :  { %v380_v17 = vadd.f32 %v379_v8, %v177_v43  ;;  %v468_v18 = vpop.f32.mrf.mxu1  ;;  %v499_v24 = vadd.f32 %v483_v60, %v378_v59  ;;  %v492_v43 = vadd.f32 %v476_v21, %v368_v11  ;;  %v512_v53 = vmax.f32 %v496_v29, 0.0  ;;  %v520_v8 = vld [vmem:[%s1070_s10] sm:$0xff] }
  0xed   :  { %v469_v25 = vadd.f32 %v468_v18, %v266_v44  ;;  %v501_v31 = vadd.f32 %v485_v7, %v467_v4  ;;  %v497_v44 = vadd.f32 %v481_v23, %v461_v15  ;;  %v490_v46 = vadd.f32 %v474_v42, %v451_v36  ;;  %v519_v4 = vld [vmem:[%s1069_s9] sm:$0xf] }
  0xee   :  { %v500_v33 = vadd.f32 %v484_v9, %v380_v17  ;;  %v515_v49 = vmax.f32 %v499_v24, 0.0  ;;  %v514_v56 = vmax.f32 %v498_v39, 0.0  ;;  %v489_v57 = vadd.f32 %v473_v45, %v449_v41  ;;  %v521_v9 = vld [vmem:[%s1070_s10 + $0x8] sm:$0xff] }
  0xef   :  { %v502_v40 = vadd.f32 %v486_v19, %v469_v25  ;;  %v517_v54 = vmax.f32 %v501_v31, 0.0  ;;  %v508_v58 = vmax.f32 %v492_v43, 0.0  ;;  %v513_v59 = vmax.f32 %v497_v44, 0.0 }
  0xf0   :  { %v516_v32 = vmax.f32 %v500_v33, 0.0  ;;  %v507_v60 = vmax.f32 %v491_v47, 0.0  ;;  %v509_v2 = vmax.f32 %v493_v52, 0.0  ;;  %v503_v3 = vmax.f32 %v487_v30, 0.0 }
  0xf1   :  { %v518_v50 = vmax.f32 %v502_v40, 0.0  ;;  %v506_v62 = vmax.f32 %v490_v46, 0.0  ;;  %v505_v7 = vmax.f32 %v489_v57, 0.0  ;;  %v524_v10 = vcombine.high %v520_v8, %v520_v8 }
  0xf2   :  { %556 = vmatprep.subr.mxu0 %v516_v32  ;;  %v525_v12 = vcombine.high %v521_v9, %v521_v9  ;;  %v676_v17 = vcombine.high %v860_v0, %v860_v0 }
  0xf3   :  { %627 = vmatprep.subr.mxu1 %v518_v50  ;;  %557 = vmatpush1.msra.mxu0 %v515_v49 }
  0xf4   :  { %628 = vmatpush1.msra.mxu1 %v517_v54  ;;  %558 = vmatprep.subr.mxu0 %v512_v53 }
  0xf5   :  { %629 = vmatprep.subr.mxu1 %v514_v56  ;;  %559 = vmatpush1.msra.mxu0 %v511_v55 }
  0xf6   :  { %630 = vmatpush1.msra.mxu1 %v513_v59  ;;  %560 = vmatprep.subr.mxu0 %v508_v58 }
  0xf7   :  { %631 = vmatprep.subr.mxu1 %v510_v61  ;;  %561 = vmatpush1.msra.mxu0 %v507_v60 }
  0xf8   :  { %632 = vmatpush1.msra.mxu1 %v509_v2  ;;  %562 = vmatprep.subr.mxu0 %v504_v63 }
  0xf9   :  { %633 = vmatprep.subr.mxu1 %v506_v62  ;;  %563 = vmatpush1.msra.mxu0 %v503_v3 }
  0xfa   :  { %634 = vmatpush1.msra.mxu1 %v505_v7  ;;  %758 = vmatmul.mubr.msk.f32.vlgmr.msra.gmra.mxu0 %vm528_vm2, %v519_v4 }
  0xfb   :  { %759 = vmatmul.mubr.msk.f32.vlgmr.msra.gmra.mxu1 %vm528_vm2, %v519_v4 }
 0x1ba   :  { %v598_v11 = vpop.f32.mrf.mxu0 }
 0x1bb   :  { %v599_v15 = vadd.f32 %v598_v11, %v520_v8  ;;  %v669_v16 = vpop.f32.mrf.mxu1 }
 0x1bc   :  { %v670_v18 = vadd.f32 %v669_v16, %v521_v9  ;;  %v600_v19 = vpop.f32.mrf.mxu0 }
 0x1bd   :  { %v680_v21 = vsub.f32 %v599_v15, %v860_v0  ;;  %v601_v22 = vadd.f32 %v600_v19, %v524_v10  ;;  %v671_v23 = vpop.f32.mrf.mxu1  ;;  %v698_v0 = vld [vmem:[%s1065_s5] sm:$0xff] }
 0x1be   :  { %v682_v24 = vsub.f32 %v670_v18, %v878_v5  ;;  %v672_v25 = vadd.f32 %v671_v23, %v525_v12  ;;  %v699_v5 = vld [vmem:[%s1065_s5 + $0x8] sm:$0xff]  ;;  %s768_s5 = scalar_lea.vmem %s725_s24, 256 }
 0x1bf   :  { %v681_v26 = vsub.f32 %v601_v22, %v676_v17  ;;  %v704_v27 = vcombine.low %v599_v15, %v601_v22  ;;  %v684_v31 = vmul.f32 %v680_v21, %v680_v21  ;;  %p769_p0 = scmp.ne.s32.totalorder %s725_s24, %s768_s5  ;;  %p774_p2 = scmp.lt.s32.totalorder %s768_s5, %s768_s5 }
 0x1c0   :  { %v683_v28 = vsub.f32 %v672_v25, %v677_v20  ;;  %v705_v29 = vcombine.low %v670_v18, %v672_v25  ;;  %v686_v36 = vmul.f32 %v682_v24, %v682_v24 }
 0x1c1   :  { %v685_v33 = vmul.f32 %v681_v26, %v681_v26  ;;  %v708_v35 = vmul.f32 %v704_v27, %v865_v1  ;;  %p775_p3 = por %p774_p2, %p773_p1 }
 0x1c2   :  { %v687_v37 = vmul.f32 %v683_v28, %v683_v28  ;;  %v709_v38 = vmul.f32 %v705_v29, %v883_v6 }
 0x1c3   :  { %v692_v39 = vcombine.low %v684_v31, %v685_v33  ;;  %v710_v40 = vsub.f32 %v895_v13, %v708_v35  ;;  %p776_p4 = pnand %p775_p3, %p769_p0 }
 0x1c4   :  { %v693_v34 = vcombine.low %v686_v36, %v687_v37  ;;  %v711_v1 = vsub.f32 %v897_v14, %v709_v38 }
 0x1c5   :  { %696 = vst [vmem:[%s1071_s11] sm:$0xff] %v692_v39  ;;  %v712_v6 = vmul.f32 %v710_v40, %v698_v0 }
 0x1c6   :  { %697 = vst [vmem:[%s1071_s11 + $0x8] sm:$0xff] %v693_v34  ;;  %v713_v41 = vmul.f32 %v711_v1, %v699_v5 }
 0x1c7   :  { %714 = vst [vmem:[#allocation2] sm:$0xff] %v712_v6 }
 0x1c8   :  { %715 = vst [vmem:[#allocation2 + $0x8] sm:$0xff] %v713_v41 }
 0x1c9   :  { %779 = shalt.err (!%p776_p4)
}
 0x1ca   :  { %727 = dma.vmem_to_hbm [thread:$0]  %s725_s24, 256, %s1072_s12, [#allocation3]  }
 0x1cb   :  { %788 = dma.done.wait [#allocation3], 256  }
 0x1cc   :  { %789 = vsyncadd [#allocation3], 4294967040 }
 0x1cd   :  { %733 = vsyncpa [#allocation3], 1 }

</bundles_post_ra>
